<compile_context>
chip_gen: v7x
topology: tpu7x:2x2x1
jax: 0.10.0
libtpu: 0.0.40
codegen_flags: <defaults>
</compile_context>

<pallas_src>
import functools

import jax
import jax.numpy as jnp
from jax.experimental import pallas as pl
from jax.experimental.pallas import tpu as pltpu


# ----------------------------------------------------------------------------
# Pallas kernel: multi-hot gather of the LN-folded table, summed over L slots
# ----------------------------------------------------------------------------
def fasttext_kernel(tokens_t_ref, w_t_ref, out_t_ref):
    # tokens_t_ref : (L, BN)  int32  subword ids for BN words (lane = word)
    # w_t_ref      : (D, Vp)  f32    LN-folded table, transposed
    # out_t_ref    : (D, BN)  f32    transposed output (lane-dense stores)
    L, bn = tokens_t_ref.shape
    d, vp = w_t_ref.shape

    vocab_iota = jax.lax.broadcasted_iota(jnp.int32, (vp, 1), 0)     # hoisted
    counts = jnp.zeros((vp, bn), jnp.float32)
    # Static L-step accumulation of a single multi-hot count matrix:
    #   counts[v, n] = #{l : tokens[n, l] == v}
    # (out-of-range ids would match no row and contribute 0; ids are < V by
    #  construction of word_representation).
    for l in range(L):
        counts = counts + (
            vocab_iota == tokens_t_ref[l:l + 1, :]).astype(jnp.float32)

    # One MXU matmul replaces L gathers + L LayerNorms + L adds:
    #   out.T = W_ln.T @ counts   (counts are exact small integers)
    out_t_ref[...] = jnp.dot(w_t_ref[...], counts,
                             preferred_element_type=jnp.float32)


# ----------------------------------------------------------------------------
# Wrapper
# ----------------------------------------------------------------------------
@functools.partial(jax.jit, static_argnames=("block_n",))
def fasttext_embedding_forward(input_ids, word_representation, emb_w, a_w,
                               b_w, gamma, beta, *, block_n=1024):
    """input_ids: (B, S) int32 word ids. Returns (B*S, D) float32."""
    assert block_n % 128 == 0, "block_n must be a multiple of 128 (lane dim)"
    V, H = emb_w.shape
    D = b_w.shape[0]
    L = word_representation.shape[1]
    hp = jax.lax.Precision.HIGHEST

    # Fold Embedding -> A -> B into one (V, D) table (linear maps compose),
    # then fold the per-row LayerNorm + affine (LN of a gathered row depends
    # only on that row).  The zero pad row becomes exactly beta.
    W = jnp.dot(jnp.dot(emb_w, a_w.T, precision=hp), b_w.T, precision=hp)
    mean = jnp.mean(W, axis=-1, keepdims=True)
    ctr = W - mean
    var = jnp.mean(ctr * ctr, axis=-1, keepdims=True)        # biased, as torch
    W_ln = (ctr * jax.lax.rsqrt(var + 1e-5)
            * gamma.reshape(1, D).astype(jnp.float32)
            + beta.reshape(1, D).astype(jnp.float32))

    # Pad vocab to a 256 multiple (full-width MXU contraction on v6e/v7x; the
    # padded rows are never selected since token ids are < V).
    Vp = pl.cdiv(V, 256) * 256
    if Vp != V:
        W_ln = jnp.pad(W_ln, ((0, Vp - V), (0, 0)))
    W_ln_t = W_ln.T                                           # (D, Vp)

    # Glue: word -> bag-of-subword-ids gather (pure indexing), flatten to rows.
    tokens = word_representation[input_ids].reshape(-1, L).astype(jnp.int32)
    N = tokens.shape[0]
    # Pad the row count up to a block multiple; padded rows (token id 0) are
    # computed and then sliced off.
    Np = pl.cdiv(N, block_n) * block_n
    if Np != N:
        tokens = jnp.pad(tokens, ((0, Np - N), (0, 0)))
    tokens_t = tokens.T                                       # (L, Np) lane-dense

    grid = (Np // block_n,)
    out_t = pl.pallas_call(
        fasttext_kernel,
        out_shape=jax.ShapeDtypeStruct((D, Np), jnp.float32),
        grid_spec=pltpu.PrefetchScalarGridSpec(
            num_scalar_prefetch=0,
            grid=grid,
            in_specs=[
                # token tile: lanes = words (>= 128), sublanes = L (full dim)
                pl.BlockSpec((L, block_n), lambda i: (0, i)),
                # grid-invariant folded table: single-buffered (no benefit
                # from double buffering, halves its resident VMEM)
                pl.BlockSpec((D, Vp), lambda i: (0, 0),
                             pipeline_mode=pl.Buffered(1)),
            ],
            out_specs=pl.BlockSpec((D, block_n), lambda i: (0, i)),
        ),
        compiler_params=pltpu.CompilerParams(
            dimension_semantics=("parallel",)),
        # NOTE: raise vmem_limit_bytes here if the resident table grows
        # (v5e scoped default is 16 MiB; v6e/v7x 32 MiB).
    )(tokens_t, W_ln_t)
    return out_t.T[:N]


# ----------------------------------------------------------------------------
# Pure-JAX reference (mirrors the PyTorch forward exactly)
# ----------------------------------------------------------------------------
def reference_forward(input_ids, word_representation, emb_w, a_w, b_w, gamma,
                      beta):
    hp = jax.lax.Precision.HIGHEST
    L = word_representation.shape[1]
    tokens = word_representation[input_ids].reshape(-1, L)
    e = emb_w[tokens]                                            # (N, L, 32)
    h = jnp.einsum("nlh,dh->nld", e, a_w, precision=hp)          # Linear A
    y = jnp.einsum("nld,ed->nle", h, b_w, precision=hp)          # Linear B
    mean = y.mean(-1, keepdims=True)
    var = ((y - mean) ** 2).mean(-1, keepdims=True)
    yn = (y - mean) / jnp.sqrt(var + 1e-5) * gamma + beta
    return yn.sum(axis=1)


# ----------------------------------------------------------------------------
# Main
# ----------------------------------------------------------------------------
if __name__ == "__main__":
    # Small synthetic config consistent with the module's __init__.
    V = 64               # num_embeddings
    D = 32               # embedding_dim
    H = 32               # lr_embedding hidden size (fixed to 32 in the module)
    D2 = D // 2          # A output size
    L = 4                # max subwords per word (word_representation width)
    PAD = 1              # pad_token_id
    B, S = 4, 64         # batch, sequence  -> N = 256 rows, 2 grid steps

    key = jax.random.PRNGKey(0)
    k_rep, k_mask, k_emb, k_a, k_b, k_g, k_beta, k_ids = jax.random.split(key, 8)

    # Synthetic subword table: column 0 = the word id itself, remaining slots
    # are either subword ids or the padding id (same shape/semantics as
    # __compute_representations).
    word_rep = jax.random.randint(k_rep, (V, L), 0, V, dtype=jnp.int32)
    word_rep = word_rep.at[:, 0].set(jnp.arange(V, dtype=jnp.int32))
    pad_mask = jax.random.bernoulli(k_mask, 0.4, (V, L))
    pad_mask = pad_mask.at[:, 0].set(False)
    word_rep = jnp.where(pad_mask, jnp.int32(PAD), word_rep)

    # Deterministic xavier-normal-style parameter init (shapes as in torch).
    def xavier(k, shape, fan_in, fan_out):
        std = (2.0 / (fan_in + fan_out)) ** 0.5
        return std * jax.random.normal(k, shape, dtype=jnp.float32)

    emb_w = xavier(k_emb, (V, H), V, H)            # lr_embedding.weight
    emb_w = emb_w.at[PAD].set(0.0)                 # zero the padding row
    a_w = xavier(k_a, (D2, H), H, D2)              # A.weight  (out, in)
    b_w = xavier(k_b, (D, D2), D2, D)              # B.weight  (out, in)
    gamma = xavier(k_g, (D,), 1, D)                # layer_norm.weight
    beta = xavier(k_beta, (D,), 1, D)              # layer_norm.bias

    input_ids = jax.random.randint(k_ids, (B, S), 0, V, dtype=jnp.int32)

    out = fasttext_embedding_forward(input_ids, word_rep, emb_w, a_w, b_w,
                                     gamma, beta, block_n=128)
    out = jax.block_until_ready(out)

    ref = reference_forward(input_ids, word_rep, emb_w, a_w, b_w, gamma, beta)
    assert out.shape == (B * S, D), out.shape
    assert jnp.allclose(out, ref, rtol=1e-4, atol=1e-4), (
        float(jnp.max(jnp.abs(out - ref))))

    print("KERNEL_OK")
</pallas_src>

<mosaic_0001>
module attributes {stable_mosaic.version = 11 : i64} {
  func.func @fasttext_kernel(%arg0: i32, %arg1: memref<4x128xi32, #tpu.memory_space<vmem>>, %arg2: memref<32x256xf32, #tpu.memory_space<vmem>>, %arg3: memref<32x128xf32, #tpu.memory_space<vmem>>) attributes {dimension_semantics = [#tpu.dimension_semantics<parallel>], iteration_bounds = array<i64: 2>, scalar_prefetch = 0 : i64, scratch_operands = 0 : i64, tpu.core_type = #tpu.core_type<tc>, window_params = [{transform_indices = @transform_0, window_bounds = array<i64: 4, 128>}, {pipeline_mode = #tpu.pipeline_mode<synchronous>, transform_indices = @transform_1, window_bounds = array<i64: 32, 256>}, {transform_indices = @transform_2, window_bounds = array<i64: 32, 128>}]} {
    %0 = tpu.iota {dimensions = array<i32: 0>} : vector<256x1xi32>
    %cst = arith.constant 0.000000e+00 : f32
    %1 = vector.broadcast %cst : f32 to vector<256x128xf32>
    %c0 = arith.constant 0 : index
    %c0_0 = arith.constant 0 : index
    %2 = vector.load %arg1[%c0, %c0_0] : memref<4x128xi32, #tpu.memory_space<vmem>>, vector<1x128xi32>
    %3 = vector.broadcast %0 : vector<256x1xi32> to vector<256x128xi32>
    %4 = vector.broadcast %2 : vector<1x128xi32> to vector<256x128xi32>
    %5 = arith.cmpi eq, %3, %4 : vector<256x128xi32>
    %6 = arith.extui %5 : vector<256x128xi1> to vector<256x128xi32>
    %7 = arith.sitofp %6 : vector<256x128xi32> to vector<256x128xf32>
    %8 = arith.addf %1, %7 : vector<256x128xf32>
    %c1 = arith.constant 1 : index
    %c0_1 = arith.constant 0 : index
    %9 = vector.load %arg1[%c1, %c0_1] : memref<4x128xi32, #tpu.memory_space<vmem>>, vector<1x128xi32>
    %10 = vector.broadcast %0 : vector<256x1xi32> to vector<256x128xi32>
    %11 = vector.broadcast %9 : vector<1x128xi32> to vector<256x128xi32>
    %12 = arith.cmpi eq, %10, %11 : vector<256x128xi32>
    %13 = arith.extui %12 : vector<256x128xi1> to vector<256x128xi32>
    %14 = arith.sitofp %13 : vector<256x128xi32> to vector<256x128xf32>
    %15 = arith.addf %8, %14 : vector<256x128xf32>
    %c2 = arith.constant 2 : index
    %c0_2 = arith.constant 0 : index
    %16 = vector.load %arg1[%c2, %c0_2] : memref<4x128xi32, #tpu.memory_space<vmem>>, vector<1x128xi32>
    %17 = vector.broadcast %0 : vector<256x1xi32> to vector<256x128xi32>
    %18 = vector.broadcast %16 : vector<1x128xi32> to vector<256x128xi32>
    %19 = arith.cmpi eq, %17, %18 : vector<256x128xi32>
    %20 = arith.extui %19 : vector<256x128xi1> to vector<256x128xi32>
    %21 = arith.sitofp %20 : vector<256x128xi32> to vector<256x128xf32>
    %22 = arith.addf %15, %21 : vector<256x128xf32>
    %c3 = arith.constant 3 : index
    %c0_3 = arith.constant 0 : index
    %23 = vector.load %arg1[%c3, %c0_3] : memref<4x128xi32, #tpu.memory_space<vmem>>, vector<1x128xi32>
    %24 = vector.broadcast %0 : vector<256x1xi32> to vector<256x128xi32>
    %25 = vector.broadcast %23 : vector<1x128xi32> to vector<256x128xi32>
    %26 = arith.cmpi eq, %24, %25 : vector<256x128xi32>
    %27 = arith.extui %26 : vector<256x128xi1> to vector<256x128xi32>
    %28 = arith.sitofp %27 : vector<256x128xi32> to vector<256x128xf32>
    %29 = arith.addf %22, %28 : vector<256x128xf32>
    %c0_4 = arith.constant 0 : index
    %c0_5 = arith.constant 0 : index
    %30 = vector.load %arg2[%c0_4, %c0_5] : memref<32x256xf32, #tpu.memory_space<vmem>>, vector<32x256xf32>
    %cst_6 = arith.constant dense<0.000000e+00> : vector<32x128xf32>
    %31 = tpu.matmul %30, %29, %cst_6 {dimension_numbers = #tpu.dot_dimension_numbers<[1], [0], [0], [1], [0, 0, 1, 1], [], []>} : vector<32x256xf32>, vector<256x128xf32>, vector<32x128xf32> -> vector<32x128xf32>
    %c0_7 = arith.constant 0 : index
    %c0_8 = arith.constant 0 : index
    %32 = vector.load %arg3[%c0_7, %c0_8] : memref<32x128xf32, #tpu.memory_space<vmem>>, vector<32x128xf32>
    tpu.vector_store %arg3[%c0_7, %c0_8], %31 {strides = array<i32>} : memref<32x128xf32, #tpu.memory_space<vmem>>, vector<32x128xf32>,
    return
  }
  func.func @transform_0(%arg0: i32) -> (i32, i32) {
    %c0_i32 = arith.constant 0 : i32
    %c0_i32_0 = arith.constant 0 : i32
    return %c0_i32, %arg0 : i32, i32
  }
  func.func @transform_1(%arg0: i32) -> (i32, i32) {
    %c0_i32 = arith.constant 0 : i32
    %c0_i32_0 = arith.constant 0 : i32
    %c0_i32_1 = arith.constant 0 : i32
    return %c0_i32, %c0_i32_0 : i32, i32
  }
  func.func @transform_2(%arg0: i32) -> (i32, i32) {
    %c0_i32 = arith.constant 0 : i32
    %c0_i32_0 = arith.constant 0 : i32
    return %c0_i32, %arg0 : i32, i32
  }
}

</mosaic_0001>

<bundles_post_ra>
// kernel: fasttext_embedding_forward.1
= control target key start
LH: loop header
LB: loop body
LE: loop exit
PB: predicated region body
PF: predicated region fallthrough
CT: control target
= control target key end

     0   :  { %7 = vsyncpa [#allocation3], 0  ;;  %s1701_s0 = inlined_call_operand.vmem [shape: s32[4,256], index: 0, kind: input, shape index: {}]   ;;  %s1702_s1 = inlined_call_operand.vmem [shape: f32[32,256], index: 1, kind: input, shape index: {}]   ;;  %s1703_s2 = inlined_call_operand.hbm [shape: f32[32,256], index: 2, kind: output, shape index: {}]  }
   0x1   :  { %9 = vsyncpa [#allocation3 + $0x1], 0  ;;  %s1237_s9 = smov 0   ;;  %s1239_s10 = smov 0  }
   0x2   :  { %s1241_s11 = smov 0   ;;  %s1243_s12 = smov 0  }
   0x3 LB: > { %s1258_s13 = sadd.s32 4294967295, %s1215_s12   ;;  %s876_s14 = sadd.s32 4294967294, %s1215_s12   ;;  %s1215_s12 = sphi %s1243_s12, %s1709_s12   ;;  %s1211_s11 = sphi %s1241_s11, %s1708_s11   ;;  %s1207_s10 = sphi %s1239_s10, %s1707_s10   ;;  %s1203_s9 = sphi %s1237_s9, %s1706_s9  }
   0x4   : > { %s1262_s15 = sadd.s32 1, %s1215_s12   ;;  %s69_s16 = sadd.s32 1, %s1211_s11 }
   0x5   : > { %s66_s17 = ssub.s32 %s1215_s12, %s1262_s15  ;;  %p79_p0 = scmp.ne.s32.totalorder %s1211_s11, %s1207_s10 }
   0x6   : > { %p67_p1 = scmp.eq.s32.totalorder %s66_s17, 0  ;;  %p80_p2 = scmp.eq.s32.totalorder %s1258_s13, 1 }
   0x7   : > { %p85_p3 = scmp.ne.s32.totalorder %s1207_s10, %s1203_s9  ;;  %p86_p4 = scmp.eq.s32.totalorder %s876_s14, 1 }
   0x8   : > { %s1273_s18 = scalar_select %p67_p1, %s1211_s11, %s69_s16  }
   0x9   : > { %p1275_p5 = por %p80_p2, %p79_p0  ;;  %p1279_p6 = por %p86_p4, %p85_p3 }
   0xa   : > { %p879_p7 = scmp.ge.s32.totalorder %s1215_s12, 1  ;;  %p114_p8 = scmp.lt.s32.totalorder %s1215_s12, 3 }
   0xc   : > { %p115_p9 = pnand %p879_p7, %p114_p8 }
   0xd   : > { %p135_p10 = scmp.lt.s32.totalorder (!%p115_p9), %s1258_s13, 1  ;;  %v139_v0 = vlaneseq (!%p115_p9)  ;;  %v705_v1 = vld [vmem:[%s1702_s1 + $0x8] sm:$0xff] (!%p115_p9)  ;;  %v1217_v16 = vmov (!%p115_p9), 0.0   ;;  %s132_s23 = sand.u32 (!%p115_p9), 1, %s1207_s10  }
   0xe   : > { %118 = sbr.rel (%p115_p9) target bundleno = 367 (0x16f), region = 28  ;;  %v709_v2 = vld [vmem:[%s1702_s1 + $0x28] sm:$0xff] (!%p115_p9)  ;;  %776 = vmatprep.mubr.f32.mxu0 (!%p115_p9), %v705_v1  ;;  %s880_s24 = sshll.u32 (!%p115_p9), %s132_s23, 5 }
   0xf   : > { %786 = vmatprep.mubr.f32.mxu1 (!%p115_p9), %v709_v2  ;;  %v1293_v3 = vshrl.u32 (!%p115_p9), %v139_v0, 7  ;;  %s1015_s27 = sshll.u32 (!%p115_p9), %s1258_s13, 7  ;;  %s1218_s4 = smov (!%p115_p9), [#allocation2]  }
  0x10   : > { %s1658_s30 = scalar_lea.hbm (!%p115_p9), %s1703_s2, %s1015_s27  ;;  %s1157_s5 = sshll.u32 (!%p115_p9), %s1218_s4, 4  ;;  %s1158_s5 = int_to_ptr.vmem [resolvable:$false] %s1157_s5 }
  0x11   : > { %v156_v4 = vadd.s32 (!%p115_p9), 128, %v1293_v3  ;;  %v157_v5 = vadd.s32 (!%p115_p9), 136, %v1293_v3  ;;  %v141_v6 = vadd.s32 (!%p115_p9), 8, %v1293_v3  ;;  %v1299_v7 = vadd.s32 (!%p115_p9), 144, %v1293_v3  ;;  %s1159_s6 = scalar_lea.vmem (!%p115_p9), %s1158_s5, 1024 }
  0x12   : > { %v1305_v8 = vadd.s32 (!%p115_p9), 152, %v1293_v3  ;;  %v1308_v9 = vadd.s32 (!%p115_p9), 16, %v1293_v3  ;;  %v1311_v10 = vadd.s32 (!%p115_p9), 24, %v1293_v3  ;;  %v1314_v11 = vadd.s32 (!%p115_p9), 160, %v1293_v3 }
  0x15   : > { %s136_s25 = scalar_select %p135_p10, %s1258_s13, 1 }
  0x16   : > { %s1660_s13 = scalar_lea.sflag [#allocation3], %s132_s23 }
  0x17   : > { %s881_s26 = sshll.u32 %s136_s25, 2  ;;  %s134_s25 = scalar_lea.vmem [#allocation2], %s880_s24 }
  0x18   : > { %s138_s29 = scalar_lea.vmem %s1701_s0, %s881_s26  ;;  %s814_s26 = sshll.u32 %s134_s25, 4  ;;  %s1653_s26 = int_to_ptr.vmem [resolvable:$true] %s814_s26 }
  0x19   : > { %v1316_v12 = vld [vmem:[%s138_s29] ss:$0 sm:$0xff]  ;;  %v1318_v13 = vld [vmem:[%s138_s29 + $0x1] ss:$0 sm:$0xff]  ;;  %v1320_v14 = vld [vmem:[%s138_s29 + $0x2] ss:$0 sm:$0xff]  ;;  %p1160_p0 = scmp.lt.s32.totalorder %s1653_s26, %s1158_s5 }
  0x1a   : > { %vm193_vm0 = vcmp.eq.s32.totalorder %v156_v4, %v1316_v12  ;;  %vm194_vm1 = vcmp.eq.s32.totalorder %v157_v5, %v1316_v12  ;;  %vm326_vm2 = vcmp.eq.s32.totalorder %v156_v4, %v1318_v13  ;;  %vm327_vm3 = vcmp.eq.s32.totalorder %v157_v5, %v1318_v13  ;;  %v1326_v15 = vld [vmem:[%s138_s29 + $0x3] ss:$0 sm:$0xff]  ;;  %s1153_s3 = scalar_lea.vmem %s1653_s26, 512 }
  0x1b   : > { %v899_v17 = vsel %vm193_vm0, 1.0, %v1217_v16  ;;  %v900_v18 = vsel %vm194_vm1, 1.0, %v1217_v16  ;;  %v932_v19 = vsel %vm326_vm2, 1.0, %v1217_v16  ;;  %v933_v20 = vsel %vm327_vm3, 1.0, %v1217_v16  ;;  %p1154_p11 = scmp.ne.s32.totalorder %s1653_s26, %s1153_s3  ;;  %p1161_p1 = scmp.lt.s32.totalorder %s1159_s6, %s1153_s3 }
  0x1c   : > { %v422_v21 = vadd.f32 %v932_v19, %v899_v17  ;;  %v423_v22 = vadd.f32 %v933_v20, %v900_v18  ;;  %vm459_vm4 = vcmp.eq.s32.totalorder %v156_v4, %v1320_v14  ;;  %vm460_vm5 = vcmp.eq.s32.totalorder %v157_v5, %v1320_v14 }
  0x1d   : > { %v965_v23 = vsel %vm459_vm4, 1.0, %v1217_v16  ;;  %v966_v24 = vsel %vm460_vm5, 1.0, %v1217_v16  ;;  %vm592_vm6 = vcmp.eq.s32.totalorder %v156_v4, %v1326_v15  ;;  %vm593_vm7 = vcmp.eq.s32.totalorder %v157_v5, %v1326_v15  ;;  %p1155_p12 = pnand %p1154_p11, %p1275_p5  ;;  %p1162_p2 = por %p1161_p1, %p1160_p0 }
  0x1e   : > { %v555_v25 = vadd.f32 %v965_v23, %v422_v21  ;;  %v556_v26 = vadd.f32 %v966_v24, %v423_v22  ;;  %v998_v27 = vsel %vm592_vm6, 1.0, %v1217_v16  ;;  %v999_v28 = vsel %vm593_vm7, 1.0, %v1217_v16 }
  0x1f   : > { %vm177_vm8 = vcmp.eq.s32.totalorder %v1293_v3, %v1316_v12  ;;  %vm178_vm9 = vcmp.eq.s32.totalorder %v141_v6, %v1316_v12  ;;  %vm310_vm10 = vcmp.eq.s32.totalorder %v1293_v3, %v1318_v13  ;;  %vm311_vm11 = vcmp.eq.s32.totalorder %v141_v6, %v1318_v13  ;;  %p1156_p13 = pneg %p1155_p12 }
  0x20   : > { %v688_v29 = vadd.f32 %v998_v27, %v555_v25  ;;  %v689_v30 = vadd.f32 %v999_v28, %v556_v26  ;;  %v883_v31 = vsel %vm177_vm8, 1.0, %v1217_v16  ;;  %v884_v32 = vsel %vm178_vm9, 1.0, %v1217_v16 }
  0x21   : > { %v916_v33 = vsel %vm310_vm10, 1.0, %v1217_v16  ;;  %v917_v34 = vsel %vm311_vm11, 1.0, %v1217_v16  ;;  %vm443_vm12 = vcmp.eq.s32.totalorder %v1293_v3, %v1320_v14  ;;  %vm444_vm13 = vcmp.eq.s32.totalorder %v141_v6, %v1320_v14  ;;  %p1163_p3 = pnand %p1162_p2, %p1156_p13 }
  0x22   : > { %v1062_v35 = vpack.c.bf16 %v689_v30, %v688_v29  ;;  %v406_v36 = vadd.f32 %v916_v33, %v883_v31  ;;  %v407_v37 = vadd.f32 %v917_v34, %v884_v32  ;;  %v949_v38 = vsel %vm443_vm12, 1.0, %v1217_v16 }
  0x23   : > { %v950_v39 = vsel %vm444_vm13, 1.0, %v1217_v16  ;;  %vm576_vm14 = vcmp.eq.s32.totalorder %v1293_v3, %v1326_v15  ;;  %vm577_vm15 = vcmp.eq.s32.totalorder %v141_v6, %v1326_v15  ;;  %vm195_vm0 = vcmp.eq.s32.totalorder %v1299_v7, %v1316_v12 }
  0x24   : > { %1063 = vmatprep.subr.bf16.mxu0 %v1062_v35  ;;  %1094 = vmatprep.subr.bf16.mxu1 %v1062_v35  ;;  %v539_v40 = vadd.f32 %v949_v38, %v406_v36  ;;  %v540_v41 = vadd.f32 %v950_v39, %v407_v37  ;;  %v982_v42 = vsel %vm576_vm14, 1.0, %v1217_v16  ;;  %v983_v43 = vsel %vm577_vm15, 1.0, %v1217_v16 }
  0x25   : > { %vm196_vm1 = vcmp.eq.s32.totalorder %v1305_v8, %v1316_v12  ;;  %v901_v44 = vsel %vm195_vm0, 1.0, %v1217_v16  ;;  %vm328_vm2 = vcmp.eq.s32.totalorder %v1299_v7, %v1318_v13  ;;  %vm329_vm3 = vcmp.eq.s32.totalorder %v1305_v8, %v1318_v13 }
  0x26   : > { %v672_v45 = vadd.f32 %v982_v42, %v539_v40  ;;  %v673_v46 = vadd.f32 %v983_v43, %v540_v41  ;;  %v902_v47 = vsel %vm196_vm1, 1.0, %v1217_v16  ;;  %v934_v48 = vsel %vm328_vm2, 1.0, %v1217_v16 }
  0x27   : > { %v935_v49 = vsel %vm329_vm3, 1.0, %v1217_v16  ;;  %v424_v50 = vadd.f32 %v934_v48, %v901_v44  ;;  %vm461_vm4 = vcmp.eq.s32.totalorder %v1299_v7, %v1320_v14  ;;  %vm462_vm5 = vcmp.eq.s32.totalorder %v1305_v8, %v1320_v14 }
  0x28   : > { %v1064_v51 = vpack.c.bf16 %v673_v46, %v672_v45  ;;  %v425_v52 = vadd.f32 %v935_v49, %v902_v47  ;;  %v967_v53 = vsel %vm461_vm4, 1.0, %v1217_v16  ;;  %v968_v54 = vsel %vm462_vm5, 1.0, %v1217_v16 }
  0x29   : > { %v557_v55 = vadd.f32 %v967_v53, %v424_v50  ;;  %vm594_vm6 = vcmp.eq.s32.totalorder %v1299_v7, %v1326_v15  ;;  %vm595_vm7 = vcmp.eq.s32.totalorder %v1305_v8, %v1326_v15  ;;  %vm179_vm8 = vcmp.eq.s32.totalorder %v1308_v9, %v1316_v12 }
  0x2a   : > { %1065 = vmatpush3.bf16.msra.mxu0 %v1064_v51  ;;  %1102 = vmatpush3.bf16.msra.mxu1 %v1064_v51  ;;  %v558_v56 = vadd.f32 %v968_v54, %v425_v52  ;;  %v1000_v57 = vsel %vm594_vm6, 1.0, %v1217_v16  ;;  %v1001_v58 = vsel %vm595_vm7, 1.0, %v1217_v16  ;;  %vm180_vm9 = vcmp.eq.s32.totalorder %v1311_v10, %v1316_v12 }
  0x2b   : > { %v690_v59 = vadd.f32 %v1000_v57, %v557_v55  ;;  %v885_v60 = vsel %vm179_vm8, 1.0, %v1217_v16  ;;  %v886_v61 = vsel %vm180_vm9, 1.0, %v1217_v16  ;;  %vm312_vm10 = vcmp.eq.s32.totalorder %v1308_v9, %v1318_v13 }
  0x2c   : > { %v691_v62 = vadd.f32 %v1001_v58, %v558_v56  ;;  %vm313_vm11 = vcmp.eq.s32.totalorder %v1311_v10, %v1318_v13  ;;  %v918_v63 = vsel %vm312_vm10, 1.0, %v1217_v16  ;;  %vm445_vm12 = vcmp.eq.s32.totalorder %v1308_v9, %v1320_v14 }
  0x2d   : > { %v919_v0 = vsel %vm313_vm11, 1.0, %v1217_v16  ;;  %v408_v1 = vadd.f32 %v918_v63, %v885_v60  ;;  %vm446_vm13 = vcmp.eq.s32.totalorder %v1311_v10, %v1320_v14  ;;  %v951_v2 = vsel %vm445_vm12, 1.0, %v1217_v16 }
  0x2e   : > { %v1066_v4 = vpack.c.bf16 %v691_v62, %v690_v59  ;;  %v409_v5 = vadd.f32 %v919_v0, %v886_v61  ;;  %v952_v6 = vsel %vm446_vm13, 1.0, %v1217_v16  ;;  %vm578_vm14 = vcmp.eq.s32.totalorder %v1308_v9, %v1326_v15 }
  0x2f   : > { %v541_v7 = vadd.f32 %v951_v2, %v408_v1  ;;  %vm579_vm15 = vcmp.eq.s32.totalorder %v1311_v10, %v1326_v15  ;;  %v984_v8 = vsel %vm578_vm14, 1.0, %v1217_v16  ;;  %v161_v17 = vadd.s32 168, %v1293_v3 }
  0x30   : > { %1067 = vmatprep.subr.bf16.mxu0 %v1066_v4  ;;  %1095 = vmatprep.subr.bf16.mxu1 %v1066_v4  ;;  %v542_v18 = vadd.f32 %v952_v6, %v409_v5  ;;  %v985_v19 = vsel %vm579_vm15, 1.0, %v1217_v16  ;;  %vm197_vm0 = vcmp.eq.s32.totalorder %v1314_v11, %v1316_v12  ;;  %vm330_vm1 = vcmp.eq.s32.totalorder %v1314_v11, %v1318_v13 }
  0x31   : > { %v674_v9 = vadd.f32 %v984_v8, %v541_v7  ;;  %vm198_vm2 = vcmp.eq.s32.totalorder %v161_v17, %v1316_v12  ;;  %v903_v10 = vsel %vm197_vm0, 1.0, %v1217_v16  ;;  %vm331_vm3 = vcmp.eq.s32.totalorder %v161_v17, %v1318_v13 }
  0x32   : > { %v675_v20 = vadd.f32 %v985_v19, %v542_v18  ;;  %v904_v21 = vsel %vm198_vm2, 1.0, %v1217_v16  ;;  %v936_v22 = vsel %vm330_vm1, 1.0, %v1217_v16  ;;  %v937_v23 = vsel %vm331_vm3, 1.0, %v1217_v16 }
  0x33   : > { %v426_v24 = vadd.f32 %v936_v22, %v903_v10  ;;  %v427_v25 = vadd.f32 %v937_v23, %v904_v21  ;;  %vm463_vm4 = vcmp.eq.s32.totalorder %v1314_v11, %v1320_v14  ;;  %vm464_vm5 = vcmp.eq.s32.totalorder %v161_v17, %v1320_v14 }
  0x34   : > { %v1068_v26 = vpack.c.bf16 %v675_v20, %v674_v9  ;;  %v969_v27 = vsel %vm463_vm4, 1.0, %v1217_v16  ;;  %v970_v28 = vsel %vm464_vm5, 1.0, %v1217_v16  ;;  %vm596_vm6 = vcmp.eq.s32.totalorder %v1314_v11, %v1326_v15 }
  0x35   : > { %v559_v29 = vadd.f32 %v969_v27, %v426_v24  ;;  %v560_v30 = vadd.f32 %v970_v28, %v427_v25  ;;  %vm597_vm7 = vcmp.eq.s32.totalorder %v161_v17, %v1326_v15  ;;  %v1002_v31 = vsel %vm596_vm6, 1.0, %v1217_v16 }
  0x36   : > { %1069 = vmatpush3.bf16.msra.mxu0 %v1068_v26  ;;  %1103 = vmatpush3.bf16.msra.mxu1 %v1068_v26  ;;  %v1003_v32 = vsel %vm597_vm7, 1.0, %v1217_v16  ;;  %v144_v33 = vadd.s32 32, %v1293_v3  ;;  %v145_v34 = vadd.s32 40, %v1293_v3  ;;  %v162_v35 = vadd.s32 176, %v1293_v3 }
  0x37   : > { %v692_v36 = vadd.f32 %v1002_v31, %v559_v29  ;;  %v693_v37 = vadd.f32 %v1003_v32, %v560_v30  ;;  %v163_v11 = vadd.s32 184, %v1293_v3  ;;  %v1434_v38 = vadd.s32 48, %v1293_v3 }
  0x38   : > { %vm181_vm8 = vcmp.eq.s32.totalorder %v144_v33, %v1316_v12  ;;  %vm182_vm9 = vcmp.eq.s32.totalorder %v145_v34, %v1316_v12  ;;  %vm314_vm10 = vcmp.eq.s32.totalorder %v144_v33, %v1318_v13  ;;  %vm315_vm11 = vcmp.eq.s32.totalorder %v145_v34, %v1318_v13 }
  0x39   : > { %v1070_v39 = vpack.c.bf16 %v693_v37, %v692_v36  ;;  %v887_v40 = vsel %vm181_vm8, 1.0, %v1217_v16  ;;  %v888_v41 = vsel %vm182_vm9, 1.0, %v1217_v16  ;;  %v920_v42 = vsel %vm314_vm10, 1.0, %v1217_v16 }
  0x3a   : > { %v921_v43 = vsel %vm315_vm11, 1.0, %v1217_v16  ;;  %v410_v44 = vadd.f32 %v920_v42, %v887_v40  ;;  %vm447_vm12 = vcmp.eq.s32.totalorder %v144_v33, %v1320_v14  ;;  %vm448_vm13 = vcmp.eq.s32.totalorder %v145_v34, %v1320_v14 }
  0x3b   : > { %1071 = vmatprep.subr.bf16.mxu0 %v1070_v39  ;;  %1096 = vmatprep.subr.bf16.mxu1 %v1070_v39  ;;  %v411_v45 = vadd.f32 %v921_v43, %v888_v41  ;;  %v953_v46 = vsel %vm447_vm12, 1.0, %v1217_v16  ;;  %v954_v47 = vsel %vm448_vm13, 1.0, %v1217_v16  ;;  %vm580_vm14 = vcmp.eq.s32.totalorder %v144_v33, %v1326_v15 }
  0x3c   : > { %v543_v48 = vadd.f32 %v953_v46, %v410_v44  ;;  %vm581_vm15 = vcmp.eq.s32.totalorder %v145_v34, %v1326_v15  ;;  %v986_v49 = vsel %vm580_vm14, 1.0, %v1217_v16  ;;  %vm199_vm0 = vcmp.eq.s32.totalorder %v162_v35, %v1316_v12 }
  0x3d   : > { %v544_v50 = vadd.f32 %v954_v47, %v411_v45  ;;  %v987_v51 = vsel %vm581_vm15, 1.0, %v1217_v16  ;;  %vm200_vm1 = vcmp.eq.s32.totalorder %v163_v11, %v1316_v12  ;;  %v905_v52 = vsel %vm199_vm0, 1.0, %v1217_v16 }
  0x3e   : > { %v676_v53 = vadd.f32 %v986_v49, %v543_v48  ;;  %v906_v54 = vsel %vm200_vm1, 1.0, %v1217_v16  ;;  %vm332_vm2 = vcmp.eq.s32.totalorder %v162_v35, %v1318_v13  ;;  %vm333_vm3 = vcmp.eq.s32.totalorder %v163_v11, %v1318_v13 }
  0x3f   : > { %v677_v55 = vadd.f32 %v987_v51, %v544_v50  ;;  %v938_v56 = vsel %vm332_vm2, 1.0, %v1217_v16  ;;  %v939_v57 = vsel %vm333_vm3, 1.0, %v1217_v16  ;;  %vm465_vm4 = vcmp.eq.s32.totalorder %v162_v35, %v1320_v14 }
  0x40   : > { %v428_v58 = vadd.f32 %v938_v56, %v905_v52  ;;  %v429_v59 = vadd.f32 %v939_v57, %v906_v54  ;;  %vm466_vm5 = vcmp.eq.s32.totalorder %v163_v11, %v1320_v14  ;;  %v971_v60 = vsel %vm465_vm4, 1.0, %v1217_v16 }
  0x41   : > { %v1072_v61 = vpack.c.bf16 %v677_v55, %v676_v53  ;;  %v972_v62 = vsel %vm466_vm5, 1.0, %v1217_v16  ;;  %vm598_vm6 = vcmp.eq.s32.totalorder %v162_v35, %v1326_v15  ;;  %vm599_vm7 = vcmp.eq.s32.totalorder %v163_v11, %v1326_v15 }
  0x42   : > { %v561_v63 = vadd.f32 %v971_v60, %v428_v58  ;;  %v562_v0 = vadd.f32 %v972_v62, %v429_v59  ;;  %v1004_v1 = vsel %vm598_vm6, 1.0, %v1217_v16  ;;  %v1005_v2 = vsel %vm599_vm7, 1.0, %v1217_v16 }
  0x43   : > { %1073 = vmatpush3.bf16.msra.mxu0 %v1072_v61  ;;  %1104 = vmatpush3.bf16.msra.mxu1 %v1072_v61  ;;  %v147_v4 = vadd.s32 56, %v1293_v3  ;;  %vm183_vm8 = vcmp.eq.s32.totalorder %v1434_v38, %v1316_v12  ;;  %vm316_vm9 = vcmp.eq.s32.totalorder %v1434_v38, %v1318_v13  ;;  %vm449_vm10 = vcmp.eq.s32.totalorder %v1434_v38, %v1320_v14 }
  0x44   : > { %v694_v5 = vadd.f32 %v1004_v1, %v561_v63  ;;  %v695_v6 = vadd.f32 %v1005_v2, %v562_v0  ;;  %v889_v7 = vsel %vm183_vm8, 1.0, %v1217_v16  ;;  %v922_v8 = vsel %vm316_vm9, 1.0, %v1217_v16 }
  0x45   : > { %vm184_vm11 = vcmp.eq.s32.totalorder %v147_v4, %v1316_v12  ;;  %vm317_vm12 = vcmp.eq.s32.totalorder %v147_v4, %v1318_v13  ;;  %v412_v17 = vadd.f32 %v922_v8, %v889_v7  ;;  %vm450_vm13 = vcmp.eq.s32.totalorder %v147_v4, %v1320_v14 }
  0x46   : > { %v1074_v18 = vpack.c.bf16 %v695_v6, %v694_v5  ;;  %v890_v19 = vsel %vm184_vm11, 1.0, %v1217_v16  ;;  %v923_v9 = vsel %vm317_vm12, 1.0, %v1217_v16  ;;  %v955_v10 = vsel %vm449_vm10, 1.0, %v1217_v16 }
  0x47   : > { %v413_v20 = vadd.f32 %v923_v9, %v890_v19  ;;  %v956_v21 = vsel %vm450_vm13, 1.0, %v1217_v16  ;;  %v545_v22 = vadd.f32 %v955_v10, %v412_v17  ;;  %vm582_vm14 = vcmp.eq.s32.totalorder %v1434_v38, %v1326_v15 }
  0x48   : > { %1075 = vmatprep.subr.bf16.mxu0 %v1074_v18  ;;  %1097 = vmatprep.subr.bf16.mxu1 %v1074_v18  ;;  %vm583_vm15 = vcmp.eq.s32.totalorder %v147_v4, %v1326_v15  ;;  %v988_v23 = vsel %vm582_vm14, 1.0, %v1217_v16  ;;  %v164_v24 = vadd.s32 192, %v1293_v3  ;;  %v165_v25 = vadd.s32 200, %v1293_v3 }
  0x49   : > { %v546_v26 = vadd.f32 %v956_v21, %v413_v20  ;;  %v989_v27 = vsel %vm583_vm15, 1.0, %v1217_v16  ;;  %v678_v28 = vadd.f32 %v988_v23, %v545_v22  ;;  %v148_v29 = vadd.s32 64, %v1293_v3 }
  0x4a   : > { %vm201_vm0 = vcmp.eq.s32.totalorder %v164_v24, %v1316_v12  ;;  %vm202_vm1 = vcmp.eq.s32.totalorder %v165_v25, %v1316_v12  ;;  %vm334_vm2 = vcmp.eq.s32.totalorder %v164_v24, %v1318_v13  ;;  %vm335_vm3 = vcmp.eq.s32.totalorder %v165_v25, %v1318_v13 }
  0x4b   : > { %v679_v30 = vadd.f32 %v989_v27, %v546_v26  ;;  %v907_v31 = vsel %vm201_vm0, 1.0, %v1217_v16  ;;  %v908_v32 = vsel %vm202_vm1, 1.0, %v1217_v16  ;;  %v940_v33 = vsel %vm334_vm2, 1.0, %v1217_v16 }
  0x4c   : > { %v941_v34 = vsel %vm335_vm3, 1.0, %v1217_v16  ;;  %v430_v35 = vadd.f32 %v940_v33, %v907_v31  ;;  %vm467_vm4 = vcmp.eq.s32.totalorder %v164_v24, %v1320_v14  ;;  %vm468_vm5 = vcmp.eq.s32.totalorder %v165_v25, %v1320_v14 }
  0x4d   : > { %v1076_v36 = vpack.c.bf16 %v679_v30, %v678_v28  ;;  %v431_v37 = vadd.f32 %v941_v34, %v908_v32  ;;  %v973_v11 = vsel %vm467_vm4, 1.0, %v1217_v16  ;;  %v974_v38 = vsel %vm468_vm5, 1.0, %v1217_v16 }
  0x4e   : > { %v563_v39 = vadd.f32 %v973_v11, %v430_v35  ;;  %vm600_vm6 = vcmp.eq.s32.totalorder %v164_v24, %v1326_v15  ;;  %vm601_vm7 = vcmp.eq.s32.totalorder %v165_v25, %v1326_v15  ;;  %v149_v40 = vadd.s32 72, %v1293_v3 }
  0x4f   : > { %1077 = vmatpush3.bf16.msra.mxu0 %v1076_v36  ;;  %1105 = vmatpush3.bf16.msra.mxu1 %v1076_v36  ;;  %v564_v41 = vadd.f32 %v974_v38, %v431_v37  ;;  %v1006_v42 = vsel %vm600_vm6, 1.0, %v1217_v16  ;;  %v1007_v43 = vsel %vm601_vm7, 1.0, %v1217_v16  ;;  %vm185_vm8 = vcmp.eq.s32.totalorder %v148_v29, %v1316_v12 }
  0x50   : > { %v696_v44 = vadd.f32 %v1006_v42, %v563_v39  ;;  %vm186_vm9 = vcmp.eq.s32.totalorder %v149_v40, %v1316_v12  ;;  %v891_v45 = vsel %vm185_vm8, 1.0, %v1217_v16  ;;  %vm318_vm10 = vcmp.eq.s32.totalorder %v148_v29, %v1318_v13 }
  0x51   : > { %v697_v46 = vadd.f32 %v1007_v43, %v564_v41  ;;  %v892_v47 = vsel %vm186_vm9, 1.0, %v1217_v16  ;;  %vm319_vm11 = vcmp.eq.s32.totalorder %v149_v40, %v1318_v13  ;;  %v924_v48 = vsel %vm318_vm10, 1.0, %v1217_v16 }
  0x52   : > { %v925_v49 = vsel %vm319_vm11, 1.0, %v1217_v16  ;;  %v414_v50 = vadd.f32 %v924_v48, %v891_v45  ;;  %vm451_vm12 = vcmp.eq.s32.totalorder %v148_v29, %v1320_v14  ;;  %vm452_vm13 = vcmp.eq.s32.totalorder %v149_v40, %v1320_v14 }
  0x53   : > { %v1078_v51 = vpack.c.bf16 %v697_v46, %v696_v44  ;;  %v415_v52 = vadd.f32 %v925_v49, %v892_v47  ;;  %v957_v53 = vsel %vm451_vm12, 1.0, %v1217_v16  ;;  %v958_v54 = vsel %vm452_vm13, 1.0, %v1217_v16 }
  0x54   : > { %v547_v55 = vadd.f32 %v957_v53, %v414_v50  ;;  %vm584_vm14 = vcmp.eq.s32.totalorder %v148_v29, %v1326_v15  ;;  %vm585_vm15 = vcmp.eq.s32.totalorder %v149_v40, %v1326_v15  ;;  %v166_v56 = vadd.s32 208, %v1293_v3 }
  0x55   : > { %1079 = vmatprep.subr.bf16.mxu0 %v1078_v51  ;;  %1098 = vmatprep.subr.bf16.mxu1 %v1078_v51  ;;  %v548_v57 = vadd.f32 %v958_v54, %v415_v52  ;;  %v990_v58 = vsel %vm584_vm14, 1.0, %v1217_v16  ;;  %v991_v59 = vsel %vm585_vm15, 1.0, %v1217_v16  ;;  %v167_v60 = vadd.s32 216, %v1293_v3 }
  0x56   : > { %v680_v61 = vadd.f32 %v990_v58, %v547_v55  ;;  %vm203_vm0 = vcmp.eq.s32.totalorder %v166_v56, %v1316_v12  ;;  %vm336_vm1 = vcmp.eq.s32.totalorder %v166_v56, %v1318_v13  ;;  %vm469_vm2 = vcmp.eq.s32.totalorder %v166_v56, %v1320_v14 }
  0x57   : > { %v681_v62 = vadd.f32 %v991_v59, %v548_v57  ;;  %vm204_vm3 = vcmp.eq.s32.totalorder %v167_v60, %v1316_v12  ;;  %v909_v63 = vsel %vm203_vm0, 1.0, %v1217_v16  ;;  %vm337_vm4 = vcmp.eq.s32.totalorder %v167_v60, %v1318_v13 }
  0x58   : > { %v910_v0 = vsel %vm204_vm3, 1.0, %v1217_v16  ;;  %v942_v1 = vsel %vm336_vm1, 1.0, %v1217_v16  ;;  %v943_v2 = vsel %vm337_vm4, 1.0, %v1217_v16  ;;  %vm470_vm5 = vcmp.eq.s32.totalorder %v167_v60, %v1320_v14 }
  0x59   : > { %v1080_v4 = vpack.c.bf16 %v681_v62, %v680_v61  ;;  %v432_v5 = vadd.f32 %v942_v1, %v909_v63  ;;  %v433_v6 = vadd.f32 %v943_v2, %v910_v0  ;;  %v975_v7 = vsel %vm469_vm2, 1.0, %v1217_v16 }
  0x5a   : > { %v976_v8 = vsel %vm470_vm5, 1.0, %v1217_v16  ;;  %vm602_vm6 = vcmp.eq.s32.totalorder %v166_v56, %v1326_v15  ;;  %vm603_vm7 = vcmp.eq.s32.totalorder %v167_v60, %v1326_v15  ;;  %v150_v17 = vadd.s32 80, %v1293_v3 }
  0x5b   : > { %1081 = vmatpush3.bf16.msra.mxu0 %v1080_v4  ;;  %1106 = vmatpush3.bf16.msra.mxu1 %v1080_v4  ;;  %v565_v18 = vadd.f32 %v975_v7, %v432_v5  ;;  %v566_v19 = vadd.f32 %v976_v8, %v433_v6  ;;  %v1008_v9 = vsel %vm602_vm6, 1.0, %v1217_v16  ;;  %v1009_v10 = vsel %vm603_vm7, 1.0, %v1217_v16 }
  0x5c   : > { %v151_v20 = vadd.s32 88, %v1293_v3  ;;  %vm187_vm8 = vcmp.eq.s32.totalorder %v150_v17, %v1316_v12  ;;  %vm320_vm9 = vcmp.eq.s32.totalorder %v150_v17, %v1318_v13  ;;  %vm453_vm10 = vcmp.eq.s32.totalorder %v150_v17, %v1320_v14 }
  0x5d   : > { %v698_v21 = vadd.f32 %v1008_v9, %v565_v18  ;;  %v699_v22 = vadd.f32 %v1009_v10, %v566_v19  ;;  %v893_v23 = vsel %vm187_vm8, 1.0, %v1217_v16  ;;  %v926_v24 = vsel %vm320_vm9, 1.0, %v1217_v16 }
  0x5e   : > { %vm188_vm11 = vcmp.eq.s32.totalorder %v151_v20, %v1316_v12  ;;  %vm321_vm12 = vcmp.eq.s32.totalorder %v151_v20, %v1318_v13  ;;  %v416_v25 = vadd.f32 %v926_v24, %v893_v23  ;;  %vm454_vm13 = vcmp.eq.s32.totalorder %v151_v20, %v1320_v14 }
  0x5f   : > { %v1082_v26 = vpack.c.bf16 %v699_v22, %v698_v21  ;;  %v894_v27 = vsel %vm188_vm11, 1.0, %v1217_v16  ;;  %v927_v28 = vsel %vm321_vm12, 1.0, %v1217_v16  ;;  %v959_v29 = vsel %vm453_vm10, 1.0, %v1217_v16 }
  0x60   : > { %v417_v30 = vadd.f32 %v927_v28, %v894_v27  ;;  %v960_v31 = vsel %vm454_vm13, 1.0, %v1217_v16  ;;  %v549_v32 = vadd.f32 %v959_v29, %v416_v25  ;;  %vm586_vm14 = vcmp.eq.s32.totalorder %v150_v17, %v1326_v15 }
  0x61   : > { %1083 = vmatprep.subr.bf16.mxu0 %v1082_v26  ;;  %1099 = vmatprep.subr.bf16.mxu1 %v1082_v26  ;;  %vm587_vm15 = vcmp.eq.s32.totalorder %v151_v20, %v1326_v15  ;;  %v992_v33 = vsel %vm586_vm14, 1.0, %v1217_v16  ;;  %v168_v34 = vadd.s32 224, %v1293_v3  ;;  %v169_v35 = vadd.s32 232, %v1293_v3 }
  0x62   : > { %v550_v36 = vadd.f32 %v960_v31, %v417_v30  ;;  %v993_v37 = vsel %vm587_vm15, 1.0, %v1217_v16  ;;  %v682_v11 = vadd.f32 %v992_v33, %v549_v32  ;;  %v152_v38 = vadd.s32 96, %v1293_v3 }
  0x63   : > { %vm205_vm0 = vcmp.eq.s32.totalorder %v168_v34, %v1316_v12  ;;  %vm206_vm1 = vcmp.eq.s32.totalorder %v169_v35, %v1316_v12  ;;  %vm338_vm2 = vcmp.eq.s32.totalorder %v168_v34, %v1318_v13  ;;  %vm339_vm3 = vcmp.eq.s32.totalorder %v169_v35, %v1318_v13 }
  0x64   : > { %v683_v39 = vadd.f32 %v993_v37, %v550_v36  ;;  %v911_v40 = vsel %vm205_vm0, 1.0, %v1217_v16  ;;  %v912_v41 = vsel %vm206_vm1, 1.0, %v1217_v16  ;;  %v944_v42 = vsel %vm338_vm2, 1.0, %v1217_v16 }
  0x65   : > { %v945_v43 = vsel %vm339_vm3, 1.0, %v1217_v16  ;;  %v434_v44 = vadd.f32 %v944_v42, %v911_v40  ;;  %vm471_vm4 = vcmp.eq.s32.totalorder %v168_v34, %v1320_v14  ;;  %vm472_vm5 = vcmp.eq.s32.totalorder %v169_v35, %v1320_v14 }
  0x66   : > { %v1084_v45 = vpack.c.bf16 %v683_v39, %v682_v11  ;;  %v435_v46 = vadd.f32 %v945_v43, %v912_v41  ;;  %v977_v47 = vsel %vm471_vm4, 1.0, %v1217_v16  ;;  %v978_v48 = vsel %vm472_vm5, 1.0, %v1217_v16 }
  0x67   : > { %v567_v49 = vadd.f32 %v977_v47, %v434_v44  ;;  %vm604_vm6 = vcmp.eq.s32.totalorder %v168_v34, %v1326_v15  ;;  %vm605_vm7 = vcmp.eq.s32.totalorder %v169_v35, %v1326_v15  ;;  %v153_v50 = vadd.s32 104, %v1293_v3  ;;  %v704_v44 = vld [vmem:[%s1702_s1] sm:$0xff]  ;;  %v710_v47 = vld [vmem:[%s1702_s1 + $0x30] sm:$0xff] }
  0x68   : > { %1085 = vmatpush3.bf16.msra.mxu0 %v1084_v45  ;;  %1107 = vmatpush3.bf16.msra.mxu1 %v1084_v45  ;;  %v568_v51 = vadd.f32 %v978_v48, %v435_v46  ;;  %v1010_v52 = vsel %vm604_vm6, 1.0, %v1217_v16  ;;  %v1011_v53 = vsel %vm605_vm7, 1.0, %v1217_v16  ;;  %vm189_vm8 = vcmp.eq.s32.totalorder %v152_v38, %v1316_v12  ;;  %v708_v45 = vld [vmem:[%s1702_s1 + $0x20] sm:$0xff]  ;;  %v706_v46 = vld [vmem:[%s1702_s1 + $0x10] sm:$0xff] }
  0x69   : > { %v700_v54 = vadd.f32 %v1010_v52, %v567_v49  ;;  %vm190_vm9 = vcmp.eq.s32.totalorder %v153_v50, %v1316_v12  ;;  %v895_v55 = vsel %vm189_vm8, 1.0, %v1217_v16  ;;  %vm322_vm10 = vcmp.eq.s32.totalorder %v152_v38, %v1318_v13 }
  0x6a   : > { %v701_v56 = vadd.f32 %v1011_v53, %v568_v51  ;;  %v896_v57 = vsel %vm190_vm9, 1.0, %v1217_v16  ;;  %vm323_vm11 = vcmp.eq.s32.totalorder %v153_v50, %v1318_v13  ;;  %v928_v58 = vsel %vm322_vm10, 1.0, %v1217_v16 }
  0x6b   : > { %v929_v59 = vsel %vm323_vm11, 1.0, %v1217_v16  ;;  %v418_v60 = vadd.f32 %v928_v58, %v895_v55  ;;  %vm455_vm12 = vcmp.eq.s32.totalorder %v152_v38, %v1320_v14  ;;  %vm456_vm13 = vcmp.eq.s32.totalorder %v153_v50, %v1320_v14 }
  0x6c   : > { %v1086_v61 = vpack.c.bf16 %v701_v56, %v700_v54  ;;  %v419_v62 = vadd.f32 %v929_v59, %v896_v57  ;;  %v961_v63 = vsel %vm455_vm12, 1.0, %v1217_v16  ;;  %v962_v0 = vsel %vm456_vm13, 1.0, %v1217_v16 }
  0x6d   : > { %v551_v1 = vadd.f32 %v961_v63, %v418_v60  ;;  %vm588_vm14 = vcmp.eq.s32.totalorder %v152_v38, %v1326_v15  ;;  %vm589_vm15 = vcmp.eq.s32.totalorder %v153_v50, %v1326_v15  ;;  %v170_v2 = vadd.s32 240, %v1293_v3 }
  0x6e   : > { %1087 = vmatprep.subr.bf16.mxu0 %v1086_v61  ;;  %1100 = vmatprep.subr.bf16.mxu1 %v1086_v61  ;;  %v552_v4 = vadd.f32 %v962_v0, %v419_v62  ;;  %v994_v5 = vsel %vm588_vm14, 1.0, %v1217_v16  ;;  %v995_v6 = vsel %vm589_vm15, 1.0, %v1217_v16  ;;  %v171_v7 = vadd.s32 248, %v1293_v3 }
  0x6f   : > { %v684_v8 = vadd.f32 %v994_v5, %v551_v1  ;;  %vm207_vm0 = vcmp.eq.s32.totalorder %v170_v2, %v1316_v12  ;;  %vm340_vm1 = vcmp.eq.s32.totalorder %v170_v2, %v1318_v13  ;;  %vm473_vm2 = vcmp.eq.s32.totalorder %v170_v2, %v1320_v14 }
  0x70   : > { %v685_v17 = vadd.f32 %v995_v6, %v552_v4  ;;  %vm208_vm3 = vcmp.eq.s32.totalorder %v171_v7, %v1316_v12  ;;  %v913_v18 = vsel %vm207_vm0, 1.0, %v1217_v16  ;;  %vm341_vm4 = vcmp.eq.s32.totalorder %v171_v7, %v1318_v13 }
  0x71   : > { %v914_v19 = vsel %vm208_vm3, 1.0, %v1217_v16  ;;  %v946_v9 = vsel %vm340_vm1, 1.0, %v1217_v16  ;;  %v947_v10 = vsel %vm341_vm4, 1.0, %v1217_v16  ;;  %vm474_vm5 = vcmp.eq.s32.totalorder %v171_v7, %v1320_v14 }
  0x72   : > { %v1088_v20 = vpack.c.bf16 %v685_v17, %v684_v8  ;;  %v436_v21 = vadd.f32 %v946_v9, %v913_v18  ;;  %v437_v22 = vadd.f32 %v947_v10, %v914_v19  ;;  %v979_v23 = vsel %vm473_vm2, 1.0, %v1217_v16 }
  0x73   : > { %v980_v24 = vsel %vm474_vm5, 1.0, %v1217_v16  ;;  %vm606_vm6 = vcmp.eq.s32.totalorder %v170_v2, %v1326_v15  ;;  %vm607_vm7 = vcmp.eq.s32.totalorder %v171_v7, %v1326_v15  ;;  %v154_v25 = vadd.s32 112, %v1293_v3 }
  0x74   : > { %1089 = vmatpush3.bf16.msra.mxu0 %v1088_v20  ;;  %1108 = vmatpush3.bf16.msra.mxu1 %v1088_v20  ;;  %v569_v26 = vadd.f32 %v979_v23, %v436_v21  ;;  %v570_v27 = vadd.f32 %v980_v24, %v437_v22  ;;  %v1012_v28 = vsel %vm606_vm6, 1.0, %v1217_v16  ;;  %v1013_v29 = vsel %vm607_vm7, 1.0, %v1217_v16 }
  0x75   : > { %v155_v30 = vadd.s32 120, %v1293_v3  ;;  %vm191_vm8 = vcmp.eq.s32.totalorder %v154_v25, %v1316_v12  ;;  %vm324_vm9 = vcmp.eq.s32.totalorder %v154_v25, %v1318_v13  ;;  %vm457_vm10 = vcmp.eq.s32.totalorder %v154_v25, %v1320_v14 }
  0x76   : > { %v702_v31 = vadd.f32 %v1012_v28, %v569_v26  ;;  %v703_v32 = vadd.f32 %v1013_v29, %v570_v27  ;;  %v897_v33 = vsel %vm191_vm8, 1.0, %v1217_v16  ;;  %v930_v34 = vsel %vm324_vm9, 1.0, %v1217_v16 }
  0x77   : > { %vm192_vm11 = vcmp.eq.s32.totalorder %v155_v30, %v1316_v12  ;;  %vm325_vm12 = vcmp.eq.s32.totalorder %v155_v30, %v1318_v13  ;;  %v420_v35 = vadd.f32 %v930_v34, %v897_v33  ;;  %vm458_vm13 = vcmp.eq.s32.totalorder %v155_v30, %v1320_v14 }
  0x78   : > { %v1090_v3 = vpack.c.bf16 %v703_v32, %v702_v31  ;;  %v898_v36 = vsel %vm192_vm11, 1.0, %v1217_v16  ;;  %v931_v37 = vsel %vm325_vm12, 1.0, %v1217_v16  ;;  %v963_v11 = vsel %vm457_vm10, 1.0, %v1217_v16 }
  0x79   : > { %v421_v38 = vadd.f32 %v931_v37, %v898_v36  ;;  %v964_v39 = vsel %vm458_vm13, 1.0, %v1217_v16  ;;  %v553_v40 = vadd.f32 %v963_v11, %v420_v35  ;;  %vm590_vm14 = vcmp.eq.s32.totalorder %v154_v25, %v1326_v15 }
  0x7a   : > { %1091 = vmatprep.subr.bf16.mxu0 %v1090_v3  ;;  %1101 = vmatprep.subr.bf16.mxu1 %v1090_v3  ;;  %vm591_vm15 = vcmp.eq.s32.totalorder %v155_v30, %v1326_v15  ;;  %v996_v12 = vsel %vm590_vm14, 1.0, %v1217_v16  ;;  %v707_v15 = vld [vmem:[%s1702_s1 + $0x18] sm:$0xff] }
  0x7b   : > { %v554_v13 = vadd.f32 %v964_v39, %v421_v38  ;;  %v997_v14 = vsel %vm591_vm15, 1.0, %v1217_v16  ;;  %v686_v41 = vadd.f32 %v996_v12, %v553_v40  ;;  %v711_v16 = vld [vmem:[%s1702_s1 + $0x38] sm:$0xff] }
  0x7d   : > { %v687_v42 = vadd.f32 %v997_v14, %v554_v13 }
  0x7f   : > { %v1092_v43 = vpack.c.bf16 %v687_v42, %v686_v41 }
  0x81   : > { %1093 = vmatpush3.bf16.msra.mxu0 %v1092_v43  ;;  %1109 = vmatpush3.bf16.msra.mxu1 %v1092_v43 }
  0x84   : > { %777 = vmatmul.mubr.f32.vlgmr.msra.gmra.mrb[0].mxu0 %v704_v44  ;;  %787 = vmatmul.mubr.f32.vlgmr.msra.gmra.mrb[0].mxu1 %v708_v45 }
  0x85   : > { %781 = vmatprep.mubr.f32.mxu0 %v707_v15  ;;  %791 = vmatprep.mubr.f32.mxu1 %v711_v16 }
  0x88   : > { %782 = vmatmul.mubr.f32.gmra.mrb[2].mxu0 %v706_v46  ;;  %792 = vmatmul.mubr.f32.gmra.mrb[2].mxu1 %v710_v47 }
 0x157   : > { %v1050_v48 = vpop.f32.mrb[0].mxu0  ;;  %v1056_v49 = vpop.f32.mrb[0].mxu1 }
 0x158   : > { %v1051_v50 = vpop.f32.mrb[1].mxu0  ;;  %v1057_v51 = vpop.f32.mrb[1].mxu1 }
 0x159   : > { %v1052_v52 = vadd.f32 %v1051_v50, %v1050_v48  ;;  %v1058_v53 = vadd.f32 %v1057_v51, %v1056_v49 }
 0x15b   : > { %797 = vst [vmem:[%s134_s25] sm:$0xff] %v1052_v52  ;;  %799 = vst [vmem:[%s134_s25 + $0x10] sm:$0xff] %v1058_v53  ;;  %v1053_v54 = vpop.f32.mrb[2].mxu0  ;;  %v1059_v55 = vpop.f32.mrb[2].mxu1 }
 0x15c   : > { %v1054_v56 = vpop.f32.mrb[3].mxu0  ;;  %v1060_v57 = vpop.f32.mrb[3].mxu1 }
 0x15d   : > { %v1055_v58 = vadd.f32 %v1054_v56, %v1053_v54  ;;  %v1061_v59 = vadd.f32 %v1060_v57, %v1059_v55 }
 0x15f   : > { %798 = vst [vmem:[%s134_s25 + $0x8] sm:$0xff] %v1055_v58  ;;  %800 = vst [vmem:[%s134_s25 + $0x18] sm:$0xff] %v1061_v59 }
 0x160   : > { %1166 = shalt.err (!%p1163_p3)
}
 0x161   : > { %s1167_s7 = scalar_lea.hbm %s1658_s30, 512  ;;  %s1171_s16 = scalar_lea.hbm %s1703_s2, 1024 }
 0x162   : > { %p1168_p4 = scmp.ne.s32.totalorder %s1658_s30, %s1167_s7  ;;  %p1172_p9 = scmp.lt.u32.totalorder %s1658_s30, %s1703_s2 }
 0x163   : > { %p1173_p10 = scmp.lt.u32.totalorder %s1171_s16, %s1167_s7  ;;  %p1175_p12 = scmp.lt.u32.totalorder %s1167_s7, %s1658_s30 }
 0x164   : > { %p1169_p7 = pnand %p1168_p4, %p1275_p5 }
 0x165   : > { %p1174_p11 = por %p1173_p10, %p1172_p9 }
 0x166   : > { %p1170_p8 = pneg %p1169_p7 }
 0x167   : > { %p1176_p13 = por %p1175_p12, %p1174_p11 }
 0x169   : > { %p1177_p0 = pnand %p1176_p13, %p1170_p8 }
 0x16b   : > { %1180 = shalt.err (!%p1177_p0)
}
 0x16c   : > { %s1219_s22 = smov 128   ;;  %s1220_s23 = smov 256  }
 0x16d   : > { %s1221_s24 = smov 8  }
 0x16e   : > { %1110 = dma.vmem_to_hbm [thread:$0]  (%p1275_p5), %s1653_s26, 512, %s1658_s30, %s1660_s13, %s1219_s22, %s1220_s23, %s1221_s24  }
 0x16f PF: > { %p1116_p1 = scmp.ge.s32.totalorder %s1215_s12, 2  ;;  %s829_s25 = sand.u32 1, %s1203_s9  }
 0x170   : > { %s830_s27 = scalar_lea.sflag [#allocation3], %s829_s25 }
 0x171   : > { %p1113_p2 = pnand %p1116_p1, %p1279_p6 }
 0x173   : > { %1198 = dma.done.wait (!%p1113_p2), %s830_s27, 512  }
 0x174   : > { %1200 = vsyncadd (!%p1113_p2), %s830_s27, 4294966784  ;;  %p12_p3 = scmp.ge.s32.totalorder %s1262_s15, 4   ;;  %s1706_s9 = smov %s1207_s10 }
 0x175   : > { %s1707_s10 = smov %s1211_s11  ;;  %s1708_s11 = smov %s1273_s18 }
 0x176   : > { %s1709_s12 = smov %s1262_s15  ;;  %14 = sbr.rel (!%p12_p3) target bundleno = 3 (0x3), region = 63 }
 0x17d   :  { %835 = vsyncpa [#allocation3], 1 }
 0x17e   :  { %837 = vsyncpa [#allocation3 + $0x1], 1 }

</bundles_post_ra>
